<compile_context>
chip_gen: v6e
topology: v6e:2x2x1
jax: 0.10.0
libtpu: 0.0.40
codegen_flags: <defaults>
</compile_context>

<pallas_src>
import functools

import numpy as np
import jax
import jax.numpy as jnp
from jax import lax
from jax.experimental import pallas as pl
from jax.experimental.pallas import tpu as pltpu

VMEM = pltpu.MemorySpace.VMEM


# ------------------------------ fused kernel ------------------------------- #

def _fused_forward_kernel(trellis_ref, seq_ref, conf_ref, slab_ref, o_ref,
                          *, lay, b_real, seq_len, embed):
    f32 = jnp.float32
    R = lay['R']

    def rd(name):
        r0, nr, nc = lay[name]
        return slab_ref[r0:r0 + nr, 0:nc]

    def dot(a, b):
        return jnp.dot(a, b, preferred_element_type=f32)

    def relu(v):
        return jnp.maximum(v, 0.0)

    # --- trellis branch: conv1+BN(folded)+relu as one matmul, then fc11/fc12 ---
    t1 = relu(dot(trellis_ref[...], rd('w_conv')) + rd('b_conv'))   # (Bp, convh*nf)
    t2 = relu(dot(t1, rd('w11')) + rd('b11'))                       # (Bp, 3R)
    x1 = relu(dot(t2, rd('w12')) + rd('b12'))                       # (Bp, R)

    # --- sequence branch: LSTM (zero init state), last hidden, fc2+relu ---
    seqv = seq_ref[...]                                             # (Bp, T*E), col = t*E + e
    wih, whh, blstm = rd('wih'), rd('whh'), rd('b_lstm')            # gate cols = [i | f | o | g]
    Bp = seqv.shape[0]
    h = jnp.zeros((Bp, R), f32)
    c = jnp.zeros((Bp, R), f32)
    for t in range(seq_len):        # small static trip count -> fully unrolled
        x_t = seqv[:, t * embed:(t + 1) * embed]                    # static lane slice
        gates = dot(x_t, wih) + dot(h, whh) + blstm                 # (Bp, 4R)
        # sigmoid via tanh form (one EUP op over the contiguous i|f|o block)
        sg = 0.5 * jnp.tanh(0.5 * gates[:, 0:3 * R]) + 0.5
        i_g, f_g, o_g = sg[:, 0:R], sg[:, R:2 * R], sg[:, 2 * R:3 * R]
        g_g = jnp.tanh(gates[:, 3 * R:4 * R])
        c = f_g * c + i_g * g_g
        h = o_g * jnp.tanh(c)
    x2 = relu(dot(h, rd('w2')) + rd('b2'))                          # (Bp, R)

    # --- confidence branch: K=1 contraction on the VPU (broadcast mul-add) ---
    x3 = relu(conf_ref[...] * rd('w3row') + rd('b3'))               # (Bp, R)

    scal = rd('scal')                 # (1,4): [fc_b, sum(wf1), sum(wf2), sum(wf3)]
    bf = scal[:, 0:1]

    # --- PyTorch: norm taken BEFORE centering; mean is global over real rows ---
    # Re-associated: out_b = (sum(x*wf) - mean(x)*sum(wf)) * rsqrt(sum(x*x)).
    # TODO(synk): no epsilon in the norm denominator, faithful to the PyTorch module.
    def branch(x, wf, swf):
        dotv = jnp.sum(x * wf, axis=-1, keepdims=True)                        # (Bp, 1)
        mean = jnp.sum(x[:b_real, :]) * (1.0 / (b_real * x.shape[-1]))        # real rows only
        ssq = jnp.sum(x * x, axis=-1, keepdims=True)                          # (Bp, 1)
        return (dotv - mean * swf) * lax.rsqrt(ssq)

    out = (branch(x1, rd('wf1'), scal[:, 1:2])
           + branch(x2, rd('wf2'), scal[:, 2:3])
           + branch(x3, rd('wf3'), scal[:, 3:4])
           + bf)
    o_ref[...] = out


# ------------------------------ parameters --------------------------------- #

def init_params(key, *, embed=8, para_h=12, para_w=5, n_filters=4,
                filter_size=3, stride=1, rnn_hidden=16):
    convw = (para_w - (para_w - 1) - 1) // stride + 1        # == 1
    convh = (para_h - (filter_size - 1) - 1) // stride + 1
    L = convw * convh * n_filters
    ks = jax.random.split(key, 20)

    def w(k, shape, s=0.1):
        return jax.random.normal(k, shape, jnp.float32) * s

    params = dict(
        conv_w=w(ks[0], (n_filters, 1, filter_size, para_w)),
        conv_b=w(ks[1], (n_filters,)),
        bn_gamma=jax.random.uniform(ks[2], (n_filters,), jnp.float32, 0.5, 1.5),
        bn_beta=w(ks[3], (n_filters,)),
        bn_mean=w(ks[4], (n_filters,)),
        bn_var=jax.random.uniform(ks[5], (n_filters,), jnp.float32, 0.5, 1.5),
        fc11_w=w(ks[6], (3 * rnn_hidden, L)),
        fc11_b=w(ks[7], (3 * rnn_hidden,)),
        fc12_w=w(ks[8], (rnn_hidden, 3 * rnn_hidden)),
        fc12_b=w(ks[9], (rnn_hidden,)),
        fc2_w=w(ks[10], (rnn_hidden, rnn_hidden)),
        fc2_b=w(ks[11], (rnn_hidden,)),
        fc3_w=w(ks[12], (rnn_hidden, 1)),
        fc3_b=w(ks[13], (rnn_hidden,)),
        lstm_w_ih=w(ks[14], (4 * rnn_hidden, embed)),
        lstm_w_hh=w(ks[15], (4 * rnn_hidden, rnn_hidden)),
        lstm_b_ih=w(ks[16], (4 * rnn_hidden,)),
        lstm_b_hh=w(ks[17], (4 * rnn_hidden,)),
        fc_w=w(ks[18], (1, 3 * rnn_hidden)),
        fc_b=w(ks[19], (1,)),
    )
    hyper = dict(para_h=para_h, para_w=para_w, n_filters=n_filters,
                 filter_size=filter_size, stride=stride,
                 rnn_hidden=rnn_hidden, convh=convh, convw=convw, embed=embed)
    return params, hyper


def _ceil_to(n, m):
    return -(-n // m) * m


def build_layout(hyper):
    """Static slab layout: matrices on 8-row-aligned offsets, one row per bias."""
    R = hyper['rnn_hidden']
    E = hyper['embed']
    HW = hyper['para_h'] * hyper['para_w']
    CL = hyper['convh'] * hyper['convw'] * hyper['n_filters']
    lay = {'R': R}
    r = 0

    def alloc(name, rows, cols):
        nonlocal r
        lay[name] = (r, rows, cols)
        r += _ceil_to(rows, 8)

    def alloc_row(name, cols):
        nonlocal r
        lay[name] = (r, 1, cols)
        r += 1

    alloc('w_conv', HW, CL)
    alloc('w11', CL, 3 * R)
    alloc('w12', 3 * R, R)
    alloc('wih', E, 4 * R)
    alloc('whh', R, 4 * R)
    alloc('w2', R, R)
    for name, c in [('b_conv', CL), ('b11', 3 * R), ('b12', R), ('b_lstm', 4 * R),
                    ('b2', R), ('w3row', R), ('b3', R),
                    ('wf1', R), ('wf2', R), ('wf3', R), ('scal', 4)]:
        alloc_row(name, c)
    lay['rows'] = _ceil_to(r, 8)
    lay['cols'] = 128
    return lay


def prep_params(params, hyper):
    """One-time weight prep: BN fold, conv->matmul embedding, LSTM gate reorder,
    bias sums, final-fc split, all packed into a single (rows, 128) f32 slab."""
    lay = build_layout(hyper)
    eps = 1e-5
    fh, s = hyper['filter_size'], hyper['stride']
    convh, nf = hyper['convh'], hyper['n_filters']
    pw, ph, R = hyper['para_w'], hyper['para_h'], hyper['rnn_hidden']

    p = {k: np.asarray(v, np.float32) for k, v in params.items()}

    # Fold BatchNorm (eval-mode running stats) into conv weight/bias.
    scale = p['bn_gamma'] / np.sqrt(p['bn_var'] + eps)
    wc = p['conv_w'].reshape(nf, fh, pw) * scale[:, None, None]
    bc = (p['conv_b'] - p['bn_mean']) * scale + p['bn_beta']

    # Embed the conv (kernel width == W -> conv width out == 1) as one matrix
    # whose column order c*convh + h matches PyTorch's x1.view(B, -1) flatten.
    HW, CL = ph * pw, convh * nf
    w_conv = np.zeros((HW, CL), np.float32)
    for c in range(nf):
        flt = wc[c].reshape(fh * pw)
        for h in range(convh):
            r0 = h * s * pw
            w_conv[r0:r0 + fh * pw, c * convh + h] = flt
    b_conv = np.repeat(bc, convh)                                    # (CL,)

    # LSTM: PyTorch gate order [i, f, g, o] -> reorder to [i, f, o | g].
    perm = np.concatenate([np.arange(0, R), np.arange(R, 2 * R),
                           np.arange(3 * R, 4 * R), np.arange(2 * R, 3 * R)])
    wih_t = p['lstm_w_ih'].T[:, perm]
    whh_t = p['lstm_w_hh'].T[:, perm]
    b_lstm = (p['lstm_b_ih'] + p['lstm_b_hh'])[perm]

    fcw = p['fc_w'][0]
    scal = np.array([p['fc_b'][0],
                     fcw[0:R].sum(), fcw[R:2 * R].sum(), fcw[2 * R:3 * R].sum()],
                    np.float32)

    slab = np.zeros((lay['rows'], lay['cols']), np.float32)

    def put(name, arr):
        arr = np.atleast_2d(np.asarray(arr, np.float32))
        r0, nr, nc = lay[name]
        assert arr.shape == (nr, nc), (name, arr.shape, (nr, nc))
        slab[r0:r0 + nr, 0:nc] = arr

    put('w_conv', w_conv)
    put('w11', p['fc11_w'].T)
    put('w12', p['fc12_w'].T)
    put('wih', wih_t)
    put('whh', whh_t)
    put('w2', p['fc2_w'].T)
    put('b_conv', b_conv)
    put('b11', p['fc11_b'])
    put('b12', p['fc12_b'])
    put('b_lstm', b_lstm)
    put('b2', p['fc2_b'])
    put('w3row', p['fc3_w'].reshape(-1))
    put('b3', p['fc3_b'])
    put('wf1', fcw[0:R])
    put('wf2', fcw[R:2 * R])
    put('wf3', fcw[2 * R:3 * R])
    put('scal', scal)
    return jnp.asarray(slab), lay


# ----------------------------- forward (Pallas) ----------------------------- #

def make_forward(lay):
    def forward(slab, trellis_x, seq_x, conf_x):
        B = trellis_x.shape[0]
        T, E = seq_x.shape[1], seq_x.shape[2]
        Bp = max(8, _ceil_to(B, 8))                 # pad batch to f32 sublane multiple

        trellis_flat = trellis_x.reshape(B, -1)     # (B, H*W)
        seq_flat = seq_x.reshape(B, T * E)          # free reshape, col = t*E + e
        conf = conf_x.reshape(B, 1)

        def pad(x):
            if Bp == B:
                return x
            return jnp.concatenate(
                [x, jnp.zeros((Bp - B,) + x.shape[1:], x.dtype)], axis=0)

        kernel = functools.partial(_fused_forward_kernel,
                                   lay=lay, b_real=B, seq_len=T, embed=E)
        out = pl.pallas_call(
            kernel,
            out_shape=jax.ShapeDtypeStruct((Bp, 1), jnp.float32),
            in_specs=[pl.BlockSpec(memory_space=VMEM)] * 4,
            out_specs=pl.BlockSpec(memory_space=VMEM),
        )(pad(trellis_flat), pad(seq_flat), pad(conf), slab)
        return out[:B]
    return forward


# ---------------------- pure-JAX reference (for check) ---------------------- #

def ref_forward(params, hyper, trellis_x, seq_x, conf_x):
    s, R = hyper['stride'], hyper['rnn_hidden']
    eps = 1e-5
    conv = lax.conv_general_dilated(
        trellis_x, params['conv_w'], window_strides=(s, s), padding='VALID',
        dimension_numbers=('NCHW', 'OIHW', 'NCHW')) + params['conv_b'][None, :, None, None]
    bn = ((conv - params['bn_mean'][None, :, None, None])
          / jnp.sqrt(params['bn_var'] + eps)[None, :, None, None]
          * params['bn_gamma'][None, :, None, None] + params['bn_beta'][None, :, None, None])
    x1 = jnp.maximum(bn, 0.0).reshape(trellis_x.shape[0], -1)
    x1 = jnp.maximum(x1 @ params['fc11_w'].T + params['fc11_b'], 0.0)
    x1 = jnp.maximum(x1 @ params['fc12_w'].T + params['fc12_b'], 0.0)

    B, T, _ = seq_x.shape
    h = jnp.zeros((B, R), jnp.float32)
    c = jnp.zeros((B, R), jnp.float32)
    for t in range(T):
        g = (seq_x[:, t, :] @ params['lstm_w_ih'].T + h @ params['lstm_w_hh'].T
             + params['lstm_b_ih'] + params['lstm_b_hh'])
        i, f = jax.nn.sigmoid(g[:, :R]), jax.nn.sigmoid(g[:, R:2 * R])
        gg, o = jnp.tanh(g[:, 2 * R:3 * R]), jax.nn.sigmoid(g[:, 3 * R:])
        c = f * c + i * gg
        h = o * jnp.tanh(c)
    x2 = jnp.maximum(h @ params['fc2_w'].T + params['fc2_b'], 0.0)
    x3 = jnp.maximum(conf_x @ params['fc3_w'].T + params['fc3_b'], 0.0)

    def norm(x):
        n = jnp.sqrt(jnp.sum(x * x, axis=-1, keepdims=True))
        return (x - jnp.mean(x)) / n

    x = jnp.concatenate([norm(x1), norm(x2), norm(x3)], axis=-1)
    return x @ params['fc_w'].T + params['fc_b']


# ---------------------------------- main ------------------------------------ #

if __name__ == "__main__":
    key = jax.random.PRNGKey(0)
    kp, k1, k2, k3 = jax.random.split(key, 4)
    params, hyper = init_params(kp)
    slab, lay = prep_params(params, hyper)        # one-time weight layout prep

    B, T, E = 2, 6, hyper['embed']
    trellis_x = jax.random.uniform(k1, (B, 1, hyper['para_h'], hyper['para_w']), jnp.float32)
    seq_x = jax.random.normal(k2, (B, T, E), jnp.float32)
    conf_x = jax.random.uniform(k3, (B, 1), jnp.float32)

    fwd = jax.jit(make_forward(lay))
    out = jax.block_until_ready(fwd(slab, trellis_x, seq_x, conf_x))

    ref = ref_forward(params, hyper, trellis_x, seq_x, conf_x)
    assert out.shape == (B, 1), out.shape
    # Default MXU precision (bf16 passes for f32) on both sides -> modest tolerance.
    assert jnp.allclose(out, ref, atol=5e-3, rtol=5e-2), (out, ref)
    print("KERNEL_OK")
</pallas_src>

<mosaic_0001>
module attributes {stable_mosaic.version = 11 : i64} {
  func.func @_fused_forward_kernel(%arg0: memref<8x60xf32, #tpu.memory_space<vmem>>, %arg1: memref<8x48xf32, #tpu.memory_space<vmem>>, %arg2: memref<8x1xf32, #tpu.memory_space<vmem>>, %arg3: memref<208x128xf32, #tpu.memory_space<vmem>>, %arg4: memref<8x1xf32, #tpu.memory_space<vmem>>) attributes {dimension_semantics = [], scalar_prefetch = 0 : i64, scratch_operands = 0 : i64, tpu.core_type = #tpu.core_type<tc>} {
    %c0 = arith.constant 0 : index
    %c0_0 = arith.constant 0 : index
    %0 = vector.load %arg0[%c0, %c0_0] : memref<8x60xf32, #tpu.memory_space<vmem>>, vector<8x60xf32>
    %c0_1 = arith.constant 0 : index
    %c0_2 = arith.constant 0 : index
    %1 = vector.load %arg3[%c0_1, %c0_2] : memref<208x128xf32, #tpu.memory_space<vmem>>, vector<60x40xf32>
    %cst = arith.constant dense<0.000000e+00> : vector<8x40xf32>
    %2 = tpu.matmul %0, %1, %cst {dimension_numbers = #tpu.dot_dimension_numbers<[1], [0], [0], [1], [0, 0, 1, 1], [], []>} : vector<8x60xf32>, vector<60x40xf32>, vector<8x40xf32> -> vector<8x40xf32>
    %c192 = arith.constant 192 : index
    %c0_3 = arith.constant 0 : index
    %3 = vector.load %arg3[%c192, %c0_3] : memref<208x128xf32, #tpu.memory_space<vmem>>, vector<1x40xf32>
    %4 = vector.broadcast %3 : vector<1x40xf32> to vector<8x40xf32>
    %5 = arith.addf %2, %4 : vector<8x40xf32>
    %cst_4 = arith.constant 0.000000e+00 : f32
    %6 = vector.broadcast %cst_4 : f32 to vector<8x40xf32>
    %7 = arith.maximumf %5, %6 : vector<8x40xf32>
    %c64 = arith.constant 64 : index
    %c0_5 = arith.constant 0 : index
    %8 = vector.load %arg3[%c64, %c0_5] : memref<208x128xf32, #tpu.memory_space<vmem>>, vector<40x48xf32>
    %cst_6 = arith.constant dense<0.000000e+00> : vector<8x48xf32>
    %9 = tpu.matmul %7, %8, %cst_6 {dimension_numbers = #tpu.dot_dimension_numbers<[1], [0], [0], [1], [0, 0, 1, 1], [], []>} : vector<8x40xf32>, vector<40x48xf32>, vector<8x48xf32> -> vector<8x48xf32>
    %c193 = arith.constant 193 : index
    %c0_7 = arith.constant 0 : index
    %10 = vector.load %arg3[%c193, %c0_7] : memref<208x128xf32, #tpu.memory_space<vmem>>, vector<1x48xf32>
    %11 = vector.broadcast %10 : vector<1x48xf32> to vector<8x48xf32>
    %12 = arith.addf %9, %11 : vector<8x48xf32>
    %cst_8 = arith.constant 0.000000e+00 : f32
    %13 = vector.broadcast %cst_8 : f32 to vector<8x48xf32>
    %14 = arith.maximumf %12, %13 : vector<8x48xf32>
    %c104 = arith.constant 104 : index
    %c0_9 = arith.constant 0 : index
    %15 = vector.load %arg3[%c104, %c0_9] : memref<208x128xf32, #tpu.memory_space<vmem>>, vector<48x16xf32>
    %cst_10 = arith.constant dense<0.000000e+00> : vector<8x16xf32>
    %16 = tpu.matmul %14, %15, %cst_10 {dimension_numbers = #tpu.dot_dimension_numbers<[1], [0], [0], [1], [0, 0, 1, 1], [], []>} : vector<8x48xf32>, vector<48x16xf32>, vector<8x16xf32> -> vector<8x16xf32>
    %c194 = arith.constant 194 : index
    %c0_11 = arith.constant 0 : index
    %17 = vector.load %arg3[%c194, %c0_11] : memref<208x128xf32, #tpu.memory_space<vmem>>, vector<1x16xf32>
    %18 = vector.broadcast %17 : vector<1x16xf32> to vector<8x16xf32>
    %19 = arith.addf %16, %18 : vector<8x16xf32>
    %cst_12 = arith.constant 0.000000e+00 : f32
    %20 = vector.broadcast %cst_12 : f32 to vector<8x16xf32>
    %21 = arith.maximumf %19, %20 : vector<8x16xf32>
    %c0_13 = arith.constant 0 : index
    %c0_14 = arith.constant 0 : index
    %22 = vector.load %arg1[%c0_13, %c0_14] : memref<8x48xf32, #tpu.memory_space<vmem>>, vector<8x48xf32>
    %c152 = arith.constant 152 : index
    %c0_15 = arith.constant 0 : index
    %23 = vector.load %arg3[%c152, %c0_15] : memref<208x128xf32, #tpu.memory_space<vmem>>, vector<8x64xf32>
    %c160 = arith.constant 160 : index
    %c0_16 = arith.constant 0 : index
    %24 = vector.load %arg3[%c160, %c0_16] : memref<208x128xf32, #tpu.memory_space<vmem>>, vector<16x64xf32>
    %c195 = arith.constant 195 : index
    %c0_17 = arith.constant 0 : index
    %25 = vector.load %arg3[%c195, %c0_17] : memref<208x128xf32, #tpu.memory_space<vmem>>, vector<1x64xf32>
    %cst_18 = arith.constant 0.000000e+00 : f32
    %26 = vector.broadcast %cst_18 : f32 to vector<8x16xf32>
    %cst_19 = arith.constant 0.000000e+00 : f32
    %27 = vector.broadcast %cst_19 : f32 to vector<8x16xf32>
    %28 = vector.extract_strided_slice %22 {offsets = [0, 0], sizes = [8, 8], strides = [1, 1]} : vector<8x48xf32> to vector<8x8xf32>
    %cst_20 = arith.constant dense<0.000000e+00> : vector<8x64xf32>
    %29 = tpu.matmul %28, %23, %cst_20 {dimension_numbers = #tpu.dot_dimension_numbers<[1], [0], [0], [1], [0, 0, 1, 1], [], []>} : vector<8x8xf32>, vector<8x64xf32>, vector<8x64xf32> -> vector<8x64xf32>
    %cst_21 = arith.constant dense<0.000000e+00> : vector<8x64xf32>
    %30 = tpu.matmul %26, %24, %cst_21 {dimension_numbers = #tpu.dot_dimension_numbers<[1], [0], [0], [1], [0, 0, 1, 1], [], []>} : vector<8x16xf32>, vector<16x64xf32>, vector<8x64xf32> -> vector<8x64xf32>
    %31 = arith.addf %29, %30 : vector<8x64xf32>
    %32 = vector.broadcast %25 : vector<1x64xf32> to vector<8x64xf32>
    %33 = arith.addf %31, %32 : vector<8x64xf32>
    %34 = vector.extract_strided_slice %33 {offsets = [0, 0], sizes = [8, 48], strides = [1, 1]} : vector<8x64xf32> to vector<8x48xf32>
    %cst_22 = arith.constant 5.000000e-01 : f32
    %35 = vector.broadcast %cst_22 : f32 to vector<8x48xf32>
    %36 = arith.mulf %35, %34 : vector<8x48xf32>
    %37 = math.tanh %36 : vector<8x48xf32>
    %cst_23 = arith.constant 5.000000e-01 : f32
    %38 = vector.broadcast %cst_23 : f32 to vector<8x48xf32>
    %39 = arith.mulf %38, %37 : vector<8x48xf32>
    %cst_24 = arith.constant 5.000000e-01 : f32
    %40 = vector.broadcast %cst_24 : f32 to vector<8x48xf32>
    %41 = arith.addf %39, %40 : vector<8x48xf32>
    %42 = vector.extract_strided_slice %41 {offsets = [0, 0], sizes = [8, 16], strides = [1, 1]} : vector<8x48xf32> to vector<8x16xf32>
    %43 = vector.extract_strided_slice %41 {offsets = [0, 16], sizes = [8, 16], strides = [1, 1]} : vector<8x48xf32> to vector<8x16xf32>
    %44 = vector.extract_strided_slice %41 {offsets = [0, 32], sizes = [8, 16], strides = [1, 1]} : vector<8x48xf32> to vector<8x16xf32>
    %45 = vector.extract_strided_slice %33 {offsets = [0, 48], sizes = [8, 16], strides = [1, 1]} : vector<8x64xf32> to vector<8x16xf32>
    %46 = math.tanh %45 : vector<8x16xf32>
    %47 = arith.mulf %43, %27 : vector<8x16xf32>
    %48 = arith.mulf %42, %46 : vector<8x16xf32>
    %49 = arith.addf %47, %48 : vector<8x16xf32>
    %50 = math.tanh %49 : vector<8x16xf32>
    %51 = arith.mulf %44, %50 : vector<8x16xf32>
    %52 = vector.extract_strided_slice %22 {offsets = [0, 8], sizes = [8, 8], strides = [1, 1]} : vector<8x48xf32> to vector<8x8xf32>
    %cst_25 = arith.constant dense<0.000000e+00> : vector<8x64xf32>
    %53 = tpu.matmul %52, %23, %cst_25 {dimension_numbers = #tpu.dot_dimension_numbers<[1], [0], [0], [1], [0, 0, 1, 1], [], []>} : vector<8x8xf32>, vector<8x64xf32>, vector<8x64xf32> -> vector<8x64xf32>
    %cst_26 = arith.constant dense<0.000000e+00> : vector<8x64xf32>
    %54 = tpu.matmul %51, %24, %cst_26 {dimension_numbers = #tpu.dot_dimension_numbers<[1], [0], [0], [1], [0, 0, 1, 1], [], []>} : vector<8x16xf32>, vector<16x64xf32>, vector<8x64xf32> -> vector<8x64xf32>
    %55 = arith.addf %53, %54 : vector<8x64xf32>
    %56 = vector.broadcast %25 : vector<1x64xf32> to vector<8x64xf32>
    %57 = arith.addf %55, %56 : vector<8x64xf32>
    %58 = vector.extract_strided_slice %57 {offsets = [0, 0], sizes = [8, 48], strides = [1, 1]} : vector<8x64xf32> to vector<8x48xf32>
    %cst_27 = arith.constant 5.000000e-01 : f32
    %59 = vector.broadcast %cst_27 : f32 to vector<8x48xf32>
    %60 = arith.mulf %59, %58 : vector<8x48xf32>
    %61 = math.tanh %60 : vector<8x48xf32>
    %cst_28 = arith.constant 5.000000e-01 : f32
    %62 = vector.broadcast %cst_28 : f32 to vector<8x48xf32>
    %63 = arith.mulf %62, %61 : vector<8x48xf32>
    %cst_29 = arith.constant 5.000000e-01 : f32
    %64 = vector.broadcast %cst_29 : f32 to vector<8x48xf32>
    %65 = arith.addf %63, %64 : vector<8x48xf32>
    %66 = vector.extract_strided_slice %65 {offsets = [0, 0], sizes = [8, 16], strides = [1, 1]} : vector<8x48xf32> to vector<8x16xf32>
    %67 = vector.extract_strided_slice %65 {offsets = [0, 16], sizes = [8, 16], strides = [1, 1]} : vector<8x48xf32> to vector<8x16xf32>
    %68 = vector.extract_strided_slice %65 {offsets = [0, 32], sizes = [8, 16], strides = [1, 1]} : vector<8x48xf32> to vector<8x16xf32>
    %69 = vector.extract_strided_slice %57 {offsets = [0, 48], sizes = [8, 16], strides = [1, 1]} : vector<8x64xf32> to vector<8x16xf32>
    %70 = math.tanh %69 : vector<8x16xf32>
    %71 = arith.mulf %67, %49 : vector<8x16xf32>
    %72 = arith.mulf %66, %70 : vector<8x16xf32>
    %73 = arith.addf %71, %72 : vector<8x16xf32>
    %74 = math.tanh %73 : vector<8x16xf32>
    %75 = arith.mulf %68, %74 : vector<8x16xf32>
    %76 = vector.extract_strided_slice %22 {offsets = [0, 16], sizes = [8, 8], strides = [1, 1]} : vector<8x48xf32> to vector<8x8xf32>
    %cst_30 = arith.constant dense<0.000000e+00> : vector<8x64xf32>
    %77 = tpu.matmul %76, %23, %cst_30 {dimension_numbers = #tpu.dot_dimension_numbers<[1], [0], [0], [1], [0, 0, 1, 1], [], []>} : vector<8x8xf32>, vector<8x64xf32>, vector<8x64xf32> -> vector<8x64xf32>
    %cst_31 = arith.constant dense<0.000000e+00> : vector<8x64xf32>
    %78 = tpu.matmul %75, %24, %cst_31 {dimension_numbers = #tpu.dot_dimension_numbers<[1], [0], [0], [1], [0, 0, 1, 1], [], []>} : vector<8x16xf32>, vector<16x64xf32>, vector<8x64xf32> -> vector<8x64xf32>
    %79 = arith.addf %77, %78 : vector<8x64xf32>
    %80 = vector.broadcast %25 : vector<1x64xf32> to vector<8x64xf32>
    %81 = arith.addf %79, %80 : vector<8x64xf32>
    %82 = vector.extract_strided_slice %81 {offsets = [0, 0], sizes = [8, 48], strides = [1, 1]} : vector<8x64xf32> to vector<8x48xf32>
    %cst_32 = arith.constant 5.000000e-01 : f32
    %83 = vector.broadcast %cst_32 : f32 to vector<8x48xf32>
    %84 = arith.mulf %83, %82 : vector<8x48xf32>
    %85 = math.tanh %84 : vector<8x48xf32>
    %cst_33 = arith.constant 5.000000e-01 : f32
    %86 = vector.broadcast %cst_33 : f32 to vector<8x48xf32>
    %87 = arith.mulf %86, %85 : vector<8x48xf32>
    %cst_34 = arith.constant 5.000000e-01 : f32
    %88 = vector.broadcast %cst_34 : f32 to vector<8x48xf32>
    %89 = arith.addf %87, %88 : vector<8x48xf32>
    %90 = vector.extract_strided_slice %89 {offsets = [0, 0], sizes = [8, 16], strides = [1, 1]} : vector<8x48xf32> to vector<8x16xf32>
    %91 = vector.extract_strided_slice %89 {offsets = [0, 16], sizes = [8, 16], strides = [1, 1]} : vector<8x48xf32> to vector<8x16xf32>
    %92 = vector.extract_strided_slice %89 {offsets = [0, 32], sizes = [8, 16], strides = [1, 1]} : vector<8x48xf32> to vector<8x16xf32>
    %93 = vector.extract_strided_slice %81 {offsets = [0, 48], sizes = [8, 16], strides = [1, 1]} : vector<8x64xf32> to vector<8x16xf32>
    %94 = math.tanh %93 : vector<8x16xf32>
    %95 = arith.mulf %91, %73 : vector<8x16xf32>
    %96 = arith.mulf %90, %94 : vector<8x16xf32>
    %97 = arith.addf %95, %96 : vector<8x16xf32>
    %98 = math.tanh %97 : vector<8x16xf32>
    %99 = arith.mulf %92, %98 : vector<8x16xf32>
    %100 = vector.extract_strided_slice %22 {offsets = [0, 24], sizes = [8, 8], strides = [1, 1]} : vector<8x48xf32> to vector<8x8xf32>
    %cst_35 = arith.constant dense<0.000000e+00> : vector<8x64xf32>
    %101 = tpu.matmul %100, %23, %cst_35 {dimension_numbers = #tpu.dot_dimension_numbers<[1], [0], [0], [1], [0, 0, 1, 1], [], []>} : vector<8x8xf32>, vector<8x64xf32>, vector<8x64xf32> -> vector<8x64xf32>
    %cst_36 = arith.constant dense<0.000000e+00> : vector<8x64xf32>
    %102 = tpu.matmul %99, %24, %cst_36 {dimension_numbers = #tpu.dot_dimension_numbers<[1], [0], [0], [1], [0, 0, 1, 1], [], []>} : vector<8x16xf32>, vector<16x64xf32>, vector<8x64xf32> -> vector<8x64xf32>
    %103 = arith.addf %101, %102 : vector<8x64xf32>
    %104 = vector.broadcast %25 : vector<1x64xf32> to vector<8x64xf32>
    %105 = arith.addf %103, %104 : vector<8x64xf32>
    %106 = vector.extract_strided_slice %105 {offsets = [0, 0], sizes = [8, 48], strides = [1, 1]} : vector<8x64xf32> to vector<8x48xf32>
    %cst_37 = arith.constant 5.000000e-01 : f32
    %107 = vector.broadcast %cst_37 : f32 to vector<8x48xf32>
    %108 = arith.mulf %107, %106 : vector<8x48xf32>
    %109 = math.tanh %108 : vector<8x48xf32>
    %cst_38 = arith.constant 5.000000e-01 : f32
    %110 = vector.broadcast %cst_38 : f32 to vector<8x48xf32>
    %111 = arith.mulf %110, %109 : vector<8x48xf32>
    %cst_39 = arith.constant 5.000000e-01 : f32
    %112 = vector.broadcast %cst_39 : f32 to vector<8x48xf32>
    %113 = arith.addf %111, %112 : vector<8x48xf32>
    %114 = vector.extract_strided_slice %113 {offsets = [0, 0], sizes = [8, 16], strides = [1, 1]} : vector<8x48xf32> to vector<8x16xf32>
    %115 = vector.extract_strided_slice %113 {offsets = [0, 16], sizes = [8, 16], strides = [1, 1]} : vector<8x48xf32> to vector<8x16xf32>
    %116 = vector.extract_strided_slice %113 {offsets = [0, 32], sizes = [8, 16], strides = [1, 1]} : vector<8x48xf32> to vector<8x16xf32>
    %117 = vector.extract_strided_slice %105 {offsets = [0, 48], sizes = [8, 16], strides = [1, 1]} : vector<8x64xf32> to vector<8x16xf32>
    %118 = math.tanh %117 : vector<8x16xf32>
    %119 = arith.mulf %115, %97 : vector<8x16xf32>
    %120 = arith.mulf %114, %118 : vector<8x16xf32>
    %121 = arith.addf %119, %120 : vector<8x16xf32>
    %122 = math.tanh %121 : vector<8x16xf32>
    %123 = arith.mulf %116, %122 : vector<8x16xf32>
    %124 = vector.extract_strided_slice %22 {offsets = [0, 32], sizes = [8, 8], strides = [1, 1]} : vector<8x48xf32> to vector<8x8xf32>
    %cst_40 = arith.constant dense<0.000000e+00> : vector<8x64xf32>
    %125 = tpu.matmul %124, %23, %cst_40 {dimension_numbers = #tpu.dot_dimension_numbers<[1], [0], [0], [1], [0, 0, 1, 1], [], []>} : vector<8x8xf32>, vector<8x64xf32>, vector<8x64xf32> -> vector<8x64xf32>
    %cst_41 = arith.constant dense<0.000000e+00> : vector<8x64xf32>
    %126 = tpu.matmul %123, %24, %cst_41 {dimension_numbers = #tpu.dot_dimension_numbers<[1], [0], [0], [1], [0, 0, 1, 1], [], []>} : vector<8x16xf32>, vector<16x64xf32>, vector<8x64xf32> -> vector<8x64xf32>
    %127 = arith.addf %125, %126 : vector<8x64xf32>
    %128 = vector.broadcast %25 : vector<1x64xf32> to vector<8x64xf32>
    %129 = arith.addf %127, %128 : vector<8x64xf32>
    %130 = vector.extract_strided_slice %129 {offsets = [0, 0], sizes = [8, 48], strides = [1, 1]} : vector<8x64xf32> to vector<8x48xf32>
    %cst_42 = arith.constant 5.000000e-01 : f32
    %131 = vector.broadcast %cst_42 : f32 to vector<8x48xf32>
    %132 = arith.mulf %131, %130 : vector<8x48xf32>
    %133 = math.tanh %132 : vector<8x48xf32>
    %cst_43 = arith.constant 5.000000e-01 : f32
    %134 = vector.broadcast %cst_43 : f32 to vector<8x48xf32>
    %135 = arith.mulf %134, %133 : vector<8x48xf32>
    %cst_44 = arith.constant 5.000000e-01 : f32
    %136 = vector.broadcast %cst_44 : f32 to vector<8x48xf32>
    %137 = arith.addf %135, %136 : vector<8x48xf32>
    %138 = vector.extract_strided_slice %137 {offsets = [0, 0], sizes = [8, 16], strides = [1, 1]} : vector<8x48xf32> to vector<8x16xf32>
    %139 = vector.extract_strided_slice %137 {offsets = [0, 16], sizes = [8, 16], strides = [1, 1]} : vector<8x48xf32> to vector<8x16xf32>
    %140 = vector.extract_strided_slice %137 {offsets = [0, 32], sizes = [8, 16], strides = [1, 1]} : vector<8x48xf32> to vector<8x16xf32>
    %141 = vector.extract_strided_slice %129 {offsets = [0, 48], sizes = [8, 16], strides = [1, 1]} : vector<8x64xf32> to vector<8x16xf32>
    %142 = math.tanh %141 : vector<8x16xf32>
    %143 = arith.mulf %139, %121 : vector<8x16xf32>
    %144 = arith.mulf %138, %142 : vector<8x16xf32>
    %145 = arith.addf %143, %144 : vector<8x16xf32>
    %146 = math.tanh %145 : vector<8x16xf32>
    %147 = arith.mulf %140, %146 : vector<8x16xf32>
    %148 = vector.extract_strided_slice %22 {offsets = [0, 40], sizes = [8, 8], strides = [1, 1]} : vector<8x48xf32> to vector<8x8xf32>
    %cst_45 = arith.constant dense<0.000000e+00> : vector<8x64xf32>
    %149 = tpu.matmul %148, %23, %cst_45 {dimension_numbers = #tpu.dot_dimension_numbers<[1], [0], [0], [1], [0, 0, 1, 1], [], []>} : vector<8x8xf32>, vector<8x64xf32>, vector<8x64xf32> -> vector<8x64xf32>
    %cst_46 = arith.constant dense<0.000000e+00> : vector<8x64xf32>
    %150 = tpu.matmul %147, %24, %cst_46 {dimension_numbers = #tpu.dot_dimension_numbers<[1], [0], [0], [1], [0, 0, 1, 1], [], []>} : vector<8x16xf32>, vector<16x64xf32>, vector<8x64xf32> -> vector<8x64xf32>
    %151 = arith.addf %149, %150 : vector<8x64xf32>
    %152 = vector.broadcast %25 : vector<1x64xf32> to vector<8x64xf32>
    %153 = arith.addf %151, %152 : vector<8x64xf32>
    %154 = vector.extract_strided_slice %153 {offsets = [0, 0], sizes = [8, 48], strides = [1, 1]} : vector<8x64xf32> to vector<8x48xf32>
    %cst_47 = arith.constant 5.000000e-01 : f32
    %155 = vector.broadcast %cst_47 : f32 to vector<8x48xf32>
    %156 = arith.mulf %155, %154 : vector<8x48xf32>
    %157 = math.tanh %156 : vector<8x48xf32>
    %cst_48 = arith.constant 5.000000e-01 : f32
    %158 = vector.broadcast %cst_48 : f32 to vector<8x48xf32>
    %159 = arith.mulf %158, %157 : vector<8x48xf32>
    %cst_49 = arith.constant 5.000000e-01 : f32
    %160 = vector.broadcast %cst_49 : f32 to vector<8x48xf32>
    %161 = arith.addf %159, %160 : vector<8x48xf32>
    %162 = vector.extract_strided_slice %161 {offsets = [0, 0], sizes = [8, 16], strides = [1, 1]} : vector<8x48xf32> to vector<8x16xf32>
    %163 = vector.extract_strided_slice %161 {offsets = [0, 16], sizes = [8, 16], strides = [1, 1]} : vector<8x48xf32> to vector<8x16xf32>
    %164 = vector.extract_strided_slice %161 {offsets = [0, 32], sizes = [8, 16], strides = [1, 1]} : vector<8x48xf32> to vector<8x16xf32>
    %165 = vector.extract_strided_slice %153 {offsets = [0, 48], sizes = [8, 16], strides = [1, 1]} : vector<8x64xf32> to vector<8x16xf32>
    %166 = math.tanh %165 : vector<8x16xf32>
    %167 = arith.mulf %163, %145 : vector<8x16xf32>
    %168 = arith.mulf %162, %166 : vector<8x16xf32>
    %169 = arith.addf %167, %168 : vector<8x16xf32>
    %170 = math.tanh %169 : vector<8x16xf32>
    %171 = arith.mulf %164, %170 : vector<8x16xf32>
    %c176 = arith.constant 176 : index
    %c0_50 = arith.constant 0 : index
    %172 = vector.load %arg3[%c176, %c0_50] : memref<208x128xf32, #tpu.memory_space<vmem>>, vector<16x16xf32>
    %cst_51 = arith.constant dense<0.000000e+00> : vector<8x16xf32>
    %173 = tpu.matmul %171, %172, %cst_51 {dimension_numbers = #tpu.dot_dimension_numbers<[1], [0], [0], [1], [0, 0, 1, 1], [], []>} : vector<8x16xf32>, vector<16x16xf32>, vector<8x16xf32> -> vector<8x16xf32>
    %c196 = arith.constant 196 : index
    %c0_52 = arith.constant 0 : index
    %174 = vector.load %arg3[%c196, %c0_52] : memref<208x128xf32, #tpu.memory_space<vmem>>, vector<1x16xf32>
    %175 = vector.broadcast %174 : vector<1x16xf32> to vector<8x16xf32>
    %176 = arith.addf %173, %175 : vector<8x16xf32>
    %cst_53 = arith.constant 0.000000e+00 : f32
    %177 = vector.broadcast %cst_53 : f32 to vector<8x16xf32>
    %178 = arith.maximumf %176, %177 : vector<8x16xf32>
    %c0_54 = arith.constant 0 : index
    %c0_55 = arith.constant 0 : index
    %179 = vector.load %arg2[%c0_54, %c0_55] : memref<8x1xf32, #tpu.memory_space<vmem>>, vector<8x1xf32>
    %c197 = arith.constant 197 : index
    %c0_56 = arith.constant 0 : index
    %180 = vector.load %arg3[%c197, %c0_56] : memref<208x128xf32, #tpu.memory_space<vmem>>, vector<1x16xf32>
    %181 = vector.broadcast %179 : vector<8x1xf32> to vector<8x16xf32>
    %182 = vector.broadcast %180 : vector<1x16xf32> to vector<8x16xf32>
    %183 = arith.mulf %181, %182 : vector<8x16xf32>
    %c198 = arith.constant 198 : index
    %c0_57 = arith.constant 0 : index
    %184 = vector.load %arg3[%c198, %c0_57] : memref<208x128xf32, #tpu.memory_space<vmem>>, vector<1x16xf32>
    %185 = vector.broadcast %184 : vector<1x16xf32> to vector<8x16xf32>
    %186 = arith.addf %183, %185 : vector<8x16xf32>
    %cst_58 = arith.constant 0.000000e+00 : f32
    %187 = vector.broadcast %cst_58 : f32 to vector<8x16xf32>
    %188 = arith.maximumf %186, %187 : vector<8x16xf32>
    %c202 = arith.constant 202 : index
    %c0_59 = arith.constant 0 : index
    %189 = vector.load %arg3[%c202, %c0_59] : memref<208x128xf32, #tpu.memory_space<vmem>>, vector<1x4xf32>
    %190 = vector.extract_strided_slice %189 {offsets = [0, 0], sizes = [1, 1], strides = [1, 1]} : vector<1x4xf32> to vector<1x1xf32>
    %c199 = arith.constant 199 : index
    %c0_60 = arith.constant 0 : index
    %191 = vector.load %arg3[%c199, %c0_60] : memref<208x128xf32, #tpu.memory_space<vmem>>, vector<1x16xf32>
    %192 = vector.extract_strided_slice %189 {offsets = [0, 1], sizes = [1, 1], strides = [1, 1]} : vector<1x4xf32> to vector<1x1xf32>
    %193 = vector.broadcast %191 : vector<1x16xf32> to vector<8x16xf32>
    %194 = arith.mulf %21, %193 : vector<8x16xf32>
    %cst_61 = arith.constant dense<0.000000e+00> : vector<8xf32>
    %195 = vector.multi_reduction <add>, %194, %cst_61 [1] : vector<8x16xf32> to vector<8xf32>
    %196 = vector.shape_cast %195 : vector<8xf32> to vector<8x1xf32>
    %197 = vector.extract_strided_slice %21 {offsets = [0, 0], sizes = [2, 16], strides = [1, 1]} : vector<8x16xf32> to vector<2x16xf32>
    %198 = vector.shape_cast %197 : vector<2x16xf32> to vector<1x2x16xf32>
    %cst_62 = arith.constant dense<0.000000e+00> : vector<1xf32>
    %199 = vector.multi_reduction <add>, %198, %cst_62 [1, 2] : vector<1x2x16xf32> to vector<1xf32>
    %200 = vector.shape_cast %199 : vector<1xf32> to vector<1x1x1xf32>
    %201 = vector.extract %200[0, 0, 0] : f32 from vector<1x1x1xf32>
    %cst_63 = arith.constant 3.125000e-02 : f32
    %202 = arith.mulf %201, %cst_63 : f32
    %203 = arith.mulf %21, %21 : vector<8x16xf32>
    %cst_64 = arith.constant dense<0.000000e+00> : vector<8xf32>
    %204 = vector.multi_reduction <add>, %203, %cst_64 [1] : vector<8x16xf32> to vector<8xf32>
    %205 = vector.shape_cast %204 : vector<8xf32> to vector<8x1xf32>
    %206 = vector.broadcast %202 : f32 to vector<1x1xf32>
    %207 = arith.mulf %206, %192 : vector<1x1xf32>
    %208 = vector.broadcast %207 : vector<1x1xf32> to vector<8x1xf32>
    %209 = arith.subf %196, %208 : vector<8x1xf32>
    %210 = math.rsqrt %205 : vector<8x1xf32>
    %211 = arith.mulf %209, %210 : vector<8x1xf32>
    %c200 = arith.constant 200 : index
    %c0_65 = arith.constant 0 : index
    %212 = vector.load %arg3[%c200, %c0_65] : memref<208x128xf32, #tpu.memory_space<vmem>>, vector<1x16xf32>
    %213 = vector.extract_strided_slice %189 {offsets = [0, 2], sizes = [1, 1], strides = [1, 1]} : vector<1x4xf32> to vector<1x1xf32>
    %214 = vector.broadcast %212 : vector<1x16xf32> to vector<8x16xf32>
    %215 = arith.mulf %178, %214 : vector<8x16xf32>
    %cst_66 = arith.constant dense<0.000000e+00> : vector<8xf32>
    %216 = vector.multi_reduction <add>, %215, %cst_66 [1] : vector<8x16xf32> to vector<8xf32>
    %217 = vector.shape_cast %216 : vector<8xf32> to vector<8x1xf32>
    %218 = vector.extract_strided_slice %178 {offsets = [0, 0], sizes = [2, 16], strides = [1, 1]} : vector<8x16xf32> to vector<2x16xf32>
    %219 = vector.shape_cast %218 : vector<2x16xf32> to vector<1x2x16xf32>
    %cst_67 = arith.constant dense<0.000000e+00> : vector<1xf32>
    %220 = vector.multi_reduction <add>, %219, %cst_67 [1, 2] : vector<1x2x16xf32> to vector<1xf32>
    %221 = vector.shape_cast %220 : vector<1xf32> to vector<1x1x1xf32>
    %222 = vector.extract %221[0, 0, 0] : f32 from vector<1x1x1xf32>
    %cst_68 = arith.constant 3.125000e-02 : f32
    %223 = arith.mulf %222, %cst_68 : f32
    %224 = arith.mulf %178, %178 : vector<8x16xf32>
    %cst_69 = arith.constant dense<0.000000e+00> : vector<8xf32>
    %225 = vector.multi_reduction <add>, %224, %cst_69 [1] : vector<8x16xf32> to vector<8xf32>
    %226 = vector.shape_cast %225 : vector<8xf32> to vector<8x1xf32>
    %227 = vector.broadcast %223 : f32 to vector<1x1xf32>
    %228 = arith.mulf %227, %213 : vector<1x1xf32>
    %229 = vector.broadcast %228 : vector<1x1xf32> to vector<8x1xf32>
    %230 = arith.subf %217, %229 : vector<8x1xf32>
    %231 = math.rsqrt %226 : vector<8x1xf32>
    %232 = arith.mulf %230, %231 : vector<8x1xf32>
    %233 = arith.addf %211, %232 : vector<8x1xf32>
    %c201 = arith.constant 201 : index
    %c0_70 = arith.constant 0 : index
    %234 = vector.load %arg3[%c201, %c0_70] : memref<208x128xf32, #tpu.memory_space<vmem>>, vector<1x16xf32>
    %235 = vector.extract_strided_slice %189 {offsets = [0, 3], sizes = [1, 1], strides = [1, 1]} : vector<1x4xf32> to vector<1x1xf32>
    %236 = vector.broadcast %234 : vector<1x16xf32> to vector<8x16xf32>
    %237 = arith.mulf %188, %236 : vector<8x16xf32>
    %cst_71 = arith.constant dense<0.000000e+00> : vector<8xf32>
    %238 = vector.multi_reduction <add>, %237, %cst_71 [1] : vector<8x16xf32> to vector<8xf32>
    %239 = vector.shape_cast %238 : vector<8xf32> to vector<8x1xf32>
    %240 = vector.extract_strided_slice %188 {offsets = [0, 0], sizes = [2, 16], strides = [1, 1]} : vector<8x16xf32> to vector<2x16xf32>
    %241 = vector.shape_cast %240 : vector<2x16xf32> to vector<1x2x16xf32>
    %cst_72 = arith.constant dense<0.000000e+00> : vector<1xf32>
    %242 = vector.multi_reduction <add>, %241, %cst_72 [1, 2] : vector<1x2x16xf32> to vector<1xf32>
    %243 = vector.shape_cast %242 : vector<1xf32> to vector<1x1x1xf32>
    %244 = vector.extract %243[0, 0, 0] : f32 from vector<1x1x1xf32>
    %cst_73 = arith.constant 3.125000e-02 : f32
    %245 = arith.mulf %244, %cst_73 : f32
    %246 = arith.mulf %188, %188 : vector<8x16xf32>
    %cst_74 = arith.constant dense<0.000000e+00> : vector<8xf32>
    %247 = vector.multi_reduction <add>, %246, %cst_74 [1] : vector<8x16xf32> to vector<8xf32>
    %248 = vector.shape_cast %247 : vector<8xf32> to vector<8x1xf32>
    %249 = vector.broadcast %245 : f32 to vector<1x1xf32>
    %250 = arith.mulf %249, %235 : vector<1x1xf32>
    %251 = vector.broadcast %250 : vector<1x1xf32> to vector<8x1xf32>
    %252 = arith.subf %239, %251 : vector<8x1xf32>
    %253 = math.rsqrt %248 : vector<8x1xf32>
    %254 = arith.mulf %252, %253 : vector<8x1xf32>
    %255 = arith.addf %233, %254 : vector<8x1xf32>
    %256 = vector.broadcast %190 : vector<1x1xf32> to vector<8x1xf32>
    %257 = arith.addf %255, %256 : vector<8x1xf32>
    %c0_75 = arith.constant 0 : index
    %c0_76 = arith.constant 0 : index
    %258 = vector.load %arg4[%c0_75, %c0_76] : memref<8x1xf32, #tpu.memory_space<vmem>>, vector<8x1xf32>
    tpu.vector_store %arg4[%c0_75, %c0_76], %257 {strides = array<i32>} : memref<8x1xf32, #tpu.memory_space<vmem>>, vector<8x1xf32>,
    return
  }
}

</mosaic_0001>

<bundles_post_ra>
// kernel: forward.1
= control target key start
LH: loop header
LB: loop body
LE: loop exit
PB: predicated region body
PF: predicated region fallthrough
CT: control target
= control target key end

     0   :  { %9 = vsyncpa [#allocation3], 0  ;;  %s1863_s15 = smov [#allocation2]   ;;  %s2083_s0 = inlined_call_operand.vmem [shape: f32[8,60], index: 0, kind: input, shape index: {}]   ;;  %s2084_s1 = inlined_call_operand.vmem [shape: f32[8,48], index: 1, kind: input, shape index: {}]   ;;  %s2085_s2 = inlined_call_operand.vmem [shape: f32[8,1], index: 2, kind: input, shape index: {}]   ;;  %s2086_s3 = inlined_call_operand.hbm [shape: f32[208,128], index: 3, kind: input, shape index: {}]   ;;  %s2087_s4 = inlined_call_operand.vmem [shape: f32[8,1], index: 4, kind: output, shape index: {}]  }
   0x1   :  { %s21_s16 = sshll.u32 %s1863_s15, 4  ;;  %s22_s16 = int_to_ptr.vmem [resolvable:$true] %s21_s16 }
   0x2   :  { %s1849_s17 = scalar_lea.vmem %s22_s16, 3328  ;;  %p1854_p1 = scmp.lt.s32.totalorder %s22_s16, %s22_s16 }
   0x3   :  { %p1850_p0 = scmp.ne.s32.totalorder %s22_s16, %s1849_s17  ;;  %p1855_p2 = scmp.lt.s32.totalorder %s1849_s17, %s1849_s17 }
   0x5   :  { %p1856_p3 = por %p1855_p2, %p1854_p1 }
   0x7   :  { %p1857_p4 = pnand %p1856_p3, %p1850_p0 }
   0x9   :  { %1860 = shalt.err (!%p1857_p4)
}
   0xa   :  { %s1864_s18 = smov 128   ;;  %s1865_s19 = smov 8  }
   0xb   :  { %27 = dma.hbm_to_vmem [thread:$0]  %s2086_s3, 3328, %s22_s16, [#allocation3], %s1864_s18, %s1864_s18, %s1865_s19  }
   0xc   :  { %1861 = dma.done.wait [#allocation3], 3328  }
   0xd   :  { %1862 = vsyncadd [#allocation3], 4294963968  ;;  %v1866_v0 = vmov 0.0   ;;  %vm1867_vm0 = vmmov 0   ;;  %vm49_vm1 = vcmask 1043456   ;;  %v38_v2 = vld [vmem:[#allocation2 + $0x30] sm:$0xff] }
   0xe   :  { %1649 = vmatprep.subr.mxu0 %v1866_v0  ;;  %1665 = vmatprep.mubr.msk.f32.mxu0 %vm1867_vm0, %v1866_v0  ;;  %v39_v1 = vld [vmem:[#allocation2 + $0x38] sm:$0xf]  ;;  %v37_v3 = vld [vmem:[#allocation2 + $0x28] sm:$0xff]  ;;  %v36_v4 = vld [vmem:[#allocation2 + $0x20] sm:$0xff]  ;;  %vm45_vm2 = vcmask 490496   ;;  %vm374_vm3 = vcmask 64512  }
   0xf   :  { %1668 = vmatprep.subr.mxu1 %v1866_v0  ;;  %1678 = vmatprep.mubr.msk.f32.mxu1 %vm1867_vm0, %v1866_v0  ;;  %v128_v5 = vld [vmem:[#allocation2 + $0x60] sm:$0xff]  ;;  %v127_v6 = vld [vmem:[#allocation2 + $0x58] sm:$0xff]  ;;  %v34_v8 = vld [vmem:[#allocation2 + $0x10] sm:$0xff]  ;;  %vm134_vm4 = vcmask 326656   ;;  %s1869_s24 = smov 16   ;;  %vm220_vm5 = vcmask 392192  }
  0x10   :  { %1650 = vmatpush3.msk.msra.mxu0 %vm49_vm1, %v39_v1  ;;  %1669 = vmatpush3.msra.mxu1 %v128_v5  ;;  %v35_v7 = vld [vmem:[#allocation2 + $0x18] sm:$0xff]  ;;  %v33_v9 = vld [vmem:[#allocation2 + $0x8] sm:$0xff]  ;;  %v32_v10 = vld [vmem:[#allocation2] sm:$0xff]  ;;  %s1870_s25 = smov 120   ;;  %s1871_s26 = smov 96   ;;  %vm300_vm6 = vcmask 130048  }
  0x11   :  { %1651 = vmatprep.subr.mxu0 %v1866_v0  ;;  %1670 = vmatprep.subr.mxu1 %v1866_v0  ;;  %v31_v11 = vld [vmem:[%s2083_s0] sm:$0xff]  ;;  %v1925_v12 = vld [vmem:[#allocation2 + $0xa8] sm:$0xff]  ;;  %v1934_v14 = vld [vmem:[#allocation2 + $0x98] sm:$0xff]  ;;  %s1872_s27 = smov 112   ;;  %s1873_s28 = smov 104   ;;  %vm1447_vm7 = vcmask 123904  }
  0x12   :  { %1652 = vmatpush3.msra.mxu0 %v38_v2  ;;  %1671 = vmatpush3.msra.mxu1 %v127_v6  ;;  %v1928_v13 = vld [vmem:[#allocation2 + $0xa0] sm:$0xff]  ;;  %v126_v16 = vld [vmem:[#allocation2 + $0x50] sm:$0xff]  ;;  %v125_v17 = vld [vmem:[#allocation2 + $0x48] sm:$0xff]  ;;  %s1874_s29 = smov 88   ;;  %s1876_s10 = smov 127   ;;  %vm1561_vm8 = vcmask 7168  }
  0x13   :  { %1653 = vmatprep.subr.mxu0 %v1866_v0  ;;  %1672 = vmatprep.subr.mxu1 %v1866_v0  ;;  %v1945_v15 = vld [vmem:[%s2084_s1] sm:$0xff]  ;;  %v214_v31 = vld [vmem:[#allocation2 + $0x90] sm:$0xff]  ;;  %v213_v32 = vld [vmem:[#allocation2 + $0x88] sm:$0xff]  ;;  %s1868_s1 = smov 80   ;;  %s1877_s11 = smov 126  }
  0x14   :  { %1654 = vmatpush3.msra.mxu0 %v37_v3  ;;  %1673 = vmatpush3.msra.mxu1 %v126_v16  ;;  %v124_v18 = vld [vmem:[#allocation2 + $0x40] sm:$0xff]  ;;  %v211_v35 = vld [vmem:[#allocation2 + $0x78] sm:$0xff]  ;;  %v210_v36 = vld [vmem:[#allocation2 + $0x70] sm:$0xff]  ;;  %s1878_s12 = smov 1  }
  0x15   :  { %1655 = vmatprep.subr.mxu0 %v1866_v0  ;;  %1674 = vmatprep.subr.mxu1 %v1866_v0  ;;  %v1568_v19 = vld [vmem:[#allocation2 + $0xc0] ss:$0 sm:$0xff]  ;;  %v1959_v26 = vld [vmem:[#allocation2 + $0xc3] ss:$0 sm:$0xff]  ;;  %v209_v37 = vld [vmem:[#allocation2 + $0x68] sm:$0xff] }
  0x16   :  { %1656 = vmatpush3.msra.mxu0 %v36_v4  ;;  %1675 = vmatpush3.msra.mxu1 %v125_v17  ;;  %v212_v33 = vld [vmem:[#allocation2 + $0x80] sm:$0xff] }
  0x17   :  { %1657 = vmatprep.subr.mxu0 %v1866_v0  ;;  %1676 = vmatprep.subr.mxu1 %v1866_v0  ;;  %v1571_v44 = vld [vmem:[#allocation2 + $0xc1] ss:$0 sm:$0xff] }
  0x18   :  { %1658 = vmatpush3.msra.mxu0 %v35_v7  ;;  %1677 = vmatpush3.msra.mxu1 %v124_v18 }
  0x19   :  { %1659 = vmatprep.subr.mxu0 %v1866_v0  ;;  %1681 = vmatprep.subr.mxu1 %v1866_v0 }
  0x1a   :  { %1660 = vmatpush3.msra.mxu0 %v34_v8 }
  0x1b   :  { %1661 = vmatprep.subr.mxu0 %v1866_v0 }
  0x1c   :  { %1662 = vmatpush3.msra.mxu0 %v33_v9 }
  0x1d   :  { %1663 = vmatprep.subr.mxu0 %v1866_v0 }
  0x1e   :  { %1664 = vmatpush3.msra.mxu0 %v32_v10 }
  0x1f   :  { %1666 = vmatmul.mubr.msk.f32.vlgmr.msra.gmra.mxu0 %vm45_vm2, %v31_v11  ;;  %1696 = vmatprep.subr.mxu0 %v1866_v0 }
  0x20   :  { %1697 = vmatpush3.msra.mxu0 %v1925_v12  ;;  %1700 = vmatprep.mubr.msk.f32.mxu0 %vm1867_vm0, %v1866_v0 }
  0x21   :  { %1698 = vmatprep.subr.mxu0 %v1866_v0 }
  0x22   :  { %1699 = vmatpush3.msra.mxu0 %v1928_v13 }
  0x23   :  { %1701 = vmatmul.mubr.f32.vlgmr.msra.gmra.mxu0 %v1866_v0  ;;  %1703 = vmatprep.subr.mxu0 %v1866_v0 }
  0x24   :  { %1704 = vmatpush3.msra.mxu0 %v1934_v14  ;;  %1705 = vmatprep.mubr.msk.f32.mxu0 %vm1867_vm0, %v1866_v0 }
  0x25   :  { %1715 = vmatprep.subr.mxu0 %v1866_v0 }
  0x27   :  { %1706 = vmatmul.mubr.msk.f32.vlgmr.msra.gmra.mxu0 %vm374_vm3, %v1945_v15 }
  0x28   :  { %1716 = vmatpush3.msra.mxu0 %v1934_v14  ;;  %1717 = vmatprep.mubr.msk.f32.mxu0 %vm1867_vm0, %v1866_v0 }
  0x29   :  { %1727 = vmatprep.subr.mxu0 %v1866_v0 }
  0xdf   :  { %v119_v20 = vpop.f32.mrf.mxu0 }
  0xe0   :  { %v120_v21 = vadd.f32 %v1568_v19, %v119_v20 }
  0xe1   :  { %v1667_v22 = vpop.f32.mrf.mxu0 }
  0xe2   :  { %v123_v23 = vmax.f32 %v120_v21, 0.0 }
  0xe3   :  { %v370_v24 = vpop.f32.mrf.mxu0 }
  0xe4   :  { %1679 = vmatmul.mubr.msk.f32.vlgmr.msra.gmra.mxu1 %vm134_vm4, %v123_v23 }
  0xe5   :  { %v1702_v25 = vpop.f32.mrf.mxu0  ;;  %1693 = vmatprep.mubr.msk.f32.mxu1 %vm1867_vm0, %v1866_v0  ;;  %1682 = vmatpush3.msra.mxu1 %v214_v31 }
  0xe6   :  { %1683 = vmatprep.subr.mxu1 %v1866_v0 }
  0xe7   :  { %v444_v27 = vpop.f32.mrf.mxu0  ;;  %1684 = vmatpush3.msra.mxu1 %v213_v32 }
  0xe8   :  { %v445_v28 = vadd.f32 %v444_v27, %v370_v24  ;;  %1685 = vmatprep.subr.mxu1 %v1866_v0 }
  0xe9   :  { %v1707_v29 = vpop.f32.mrf.mxu0  ;;  %1686 = vmatpush3.msra.mxu1 %v212_v33 }
  0xea   :  { %v452_v30 = vadd.f32 %v1959_v26, %v445_v28  ;;  %1687 = vmatprep.subr.mxu1 %v1866_v0 }
  0xeb   :  { %1688 = vmatpush3.msra.mxu1 %v211_v35 }
  0xec   :  { %1799 = vtanh.f32 %v452_v30  ;;  %1689 = vmatprep.subr.mxu1 %v1866_v0  ;;  %v453_v38 = vmul.f32 0.5, %v452_v30 }
  0xed   :  { %1690 = vmatpush3.msra.mxu1 %v210_v36 }
  0xee   :  { %1691 = vmatprep.subr.mxu1 %v1866_v0  ;;  %1801 = vtanh.f32 %v453_v38 }
  0xef   :  { %1692 = vmatpush3.msra.mxu1 %v209_v37 }
  0xf0   :  { %1708 = vmatprep.subr.mxu1 %v1866_v0 }
  0xf9   :  { %v1800_v34 = vpop.eup %1799 }
  0xfa   :  { %460 = vrot.lane.b32.xlu0 %v1800_v34, %s1868_s1 }
  0xfb   :  { %v1802_v39 = vpop.eup %1801 }
  0xfc   :  { %v455_v40 = vmul.f32 0.5, %v1802_v39 }
  0xfe   :  { %v456_v41 = vadd.f32 0.5, %v455_v40 }
 0x100   :  { %v458_v49 = vmul.f32 0.0, %v456_v41 }
 0x16c   :  { %v461_v42 = vpop.permute.xlu0 %460 }
 0x16d   :  { %v463_v43 = vmul.f32 %v461_v42, %v456_v41 }
 0x16f   :  { %465 = vrot.lane.b32.xlu0 %v463_v43, %s1869_s24 }
 0x173   :  { %550 = vrot.lane.b32.xlu0 %v1945_v15, %s1870_s25 }
 0x1a4   :  { %v204_v45 = vpop.f32.mrf.mxu1 }
 0x1a5   :  { %v205_v46 = vadd.f32 %v1571_v44, %v204_v45 }
 0x1a6   :  { %v1680_v47 = vpop.f32.mrf.mxu1 }
 0x1a7   :  { %v208_v48 = vmax.f32 %v205_v46, 0.0 }
 0x1a9   :  { %1694 = vmatmul.mubr.msk.f32.vlgmr.msra.gmra.mxu1 %vm220_vm5, %v208_v48 }
 0x1aa   :  { %1709 = vmatpush3.msra.mxu1 %v1925_v12  ;;  %1712 = vmatprep.mubr.msk.f32.mxu1 %vm1867_vm0, %v1866_v0 }
 0x1ab   :  { %1710 = vmatprep.subr.mxu1 %v1866_v0 }
 0x1ac   :  { %1711 = vmatpush3.msra.mxu1 %v1928_v13 }
 0x1ad   :  { %1720 = vmatprep.subr.mxu1 %v1866_v0 }
 0x1e1   :  { %v466_v50 = vpop.permute.xlu0 %465 }
 0x1e2   :  { %v468_v51 = vadd.f32 %v466_v50, %v458_v49 }
 0x1e4   :  { %1803 = vtanh.f32 %v468_v51 }
 0x1e5   :  { %v551_v53 = vpop.permute.xlu0 %550 }
 0x1e6   :  { %1718 = vmatmul.mubr.msk.f32.vlgmr.msra.gmra.mxu0 %vm374_vm3, %v551_v53 }
 0x1e7   :  { %1728 = vmatpush3.msra.mxu0 %v1934_v14  ;;  %1729 = vmatprep.mubr.msk.f32.mxu0 %vm1867_vm0, %v1866_v0 }
 0x1e8   :  { %1739 = vmatprep.subr.mxu0 %v1866_v0 }
 0x1f1   :  { %v1804_v52 = vpop.eup %1803 }
 0x1f2   :  { %471 = vrot.lane.b32.xlu1 %v1804_v52, %s1869_s24 }
 0x264   :  { %v472_v54 = vpop.permute.xlu1 %471 }
 0x265   :  { %v474_v55 = vmul.f32 %v472_v54, %v456_v41 }
 0x267   :  { %476 = vrot.lane.b32.xlu1 %v474_v55, %s1871_s26 }
 0x269   :  { %v1984_v56 = vpop.f32.mrf.mxu1 }
 0x26b   :  { %v1695_v57 = vpop.f32.mrf.mxu1 }
 0x2a6   :  { %v620_v59 = vpop.f32.mrf.mxu0 }
 0x2a8   :  { %v1719_v60 = vpop.f32.mrf.mxu0 }
 0x2d9   :  { %v477_v58 = vpop.permute.xlu1 %476 }
 0x2da   :  { %1713 = vmatmul.mubr.msk.f32.vlgmr.msra.gmra.mxu1 %vm300_vm6, %v477_v58 }
 0x2db   :  { %1721 = vmatpush3.msra.mxu1 %v1925_v12  ;;  %1724 = vmatprep.mubr.msk.f32.mxu1 %vm1867_vm0, %v1866_v0 }
 0x2dc   :  { %1722 = vmatprep.subr.mxu1 %v1866_v0 }
 0x2dd   :  { %1723 = vmatpush3.msra.mxu1 %v1928_v13 }
 0x2de   :  { %1732 = vmatprep.subr.mxu1 %v1866_v0 }
 0x39a   :  { %v546_v61 = vpop.f32.mrf.mxu1 }
 0x39b   :  { %v621_v62 = vadd.f32 %v620_v59, %v546_v61 }
 0x39c   :  { %v1714_v63 = vpop.f32.mrf.mxu1 }
 0x39d   :  { %v624_v1 = vadd.f32 %v1959_v26, %v621_v62 }
 0x39f   :  { %1805 = vtanh.f32 %v624_v1  ;;  %v625_v3 = vmul.f32 0.5, %v624_v1 }
 0x3a1   :  { %1807 = vtanh.f32 %v625_v3 }
 0x3ac   :  { %v1806_v2 = vpop.eup %1805 }
 0x3ad   :  { %632 = vrot.lane.b32.xlu1 %v1806_v2, %s1868_s1 }
 0x3ae   :  { %v1808_v4 = vpop.eup %1807 }
 0x3af   :  { %v627_v5 = vmul.f32 0.5, %v1808_v4 }
 0x3b1   :  { %v628_v6 = vadd.f32 0.5, %v627_v5 }
 0x3b3   :  { %v630_v9 = vmul.f32 %v628_v6, %v468_v51 }
 0x41f   :  { %v633_v7 = vpop.permute.xlu1 %632 }
 0x420   :  { %v635_v8 = vmul.f32 %v633_v7, %v628_v6 }
 0x422   :  { %637 = vrot.lane.b32.xlu0 %v635_v8, %s1869_s24 }
 0x494   :  { %v638_v10 = vpop.permute.xlu0 %637 }
 0x495   :  { %v640_v11 = vadd.f32 %v638_v10, %v630_v9 }
 0x497   :  { %1809 = vtanh.f32 %v640_v11 }
 0x4a4   :  { %v1810_v16 = vpop.eup %1809 }
 0x4a5   :  { %643 = vrot.lane.b32.xlu1 %v1810_v16, %s1869_s24 }
 0x4a9   :  { %722 = vrot.lane.b32.xlu1 %v1945_v15, %s1872_s27 }
 0x517   :  { %v644_v17 = vpop.permute.xlu1 %643 }
 0x518   :  { %v646_v18 = vmul.f32 %v644_v17, %v628_v6 }
 0x51a   :  { %648 = vrot.lane.b32.xlu0 %v646_v18, %s1871_s26 }
 0x51b   :  { %v723_v19 = vpop.permute.xlu1 %722 }
 0x51c   :  { %1730 = vmatmul.mubr.msk.f32.vlgmr.msra.gmra.mxu0 %vm374_vm3, %v723_v19 }
 0x51d   :  { %1740 = vmatpush3.msra.mxu0 %v1934_v14  ;;  %1741 = vmatprep.mubr.msk.f32.mxu0 %vm1867_vm0, %v1866_v0 }
 0x51e   :  { %1751 = vmatprep.subr.mxu0 %v1866_v0 }
 0x58c   :  { %v649_v20 = vpop.permute.xlu0 %648 }
 0x58d   :  { %1725 = vmatmul.mubr.msk.f32.vlgmr.msra.gmra.mxu1 %vm300_vm6, %v649_v20 }
 0x58e   :  { %1733 = vmatpush3.msra.mxu1 %v1925_v12  ;;  %1736 = vmatprep.mubr.msk.f32.mxu1 %vm1867_vm0, %v1866_v0 }
 0x58f   :  { %1734 = vmatprep.subr.mxu1 %v1866_v0 }
 0x590   :  { %1735 = vmatpush3.msra.mxu1 %v1928_v13 }
 0x591   :  { %1744 = vmatprep.subr.mxu1 %v1866_v0 }
 0x5dc   :  { %v792_v21 = vpop.f32.mrf.mxu0 }
 0x5de   :  { %v1731_v22 = vpop.f32.mrf.mxu0 }
 0x64d   :  { %v718_v23 = vpop.f32.mrf.mxu1 }
 0x64e   :  { %v793_v24 = vadd.f32 %v792_v21, %v718_v23 }
 0x64f   :  { %v1726_v25 = vpop.f32.mrf.mxu1 }
 0x650   :  { %v796_v27 = vadd.f32 %v1959_v26, %v793_v24 }
 0x652   :  { %1811 = vtanh.f32 %v796_v27  ;;  %v797_v29 = vmul.f32 0.5, %v796_v27 }
 0x654   :  { %1813 = vtanh.f32 %v797_v29 }
 0x65f   :  { %v1812_v28 = vpop.eup %1811 }
 0x660   :  { %804 = vrot.lane.b32.xlu0 %v1812_v28, %s1868_s1 }
 0x661   :  { %v1814_v30 = vpop.eup %1813 }
 0x662   :  { %v799_v31 = vmul.f32 0.5, %v1814_v30 }
 0x664   :  { %v800_v32 = vadd.f32 0.5, %v799_v31 }
 0x666   :  { %v802_v35 = vmul.f32 %v800_v32, %v640_v11 }
 0x6d2   :  { %v805_v33 = vpop.permute.xlu0 %804 }
 0x6d3   :  { %v807_v34 = vmul.f32 %v805_v33, %v800_v32 }
 0x6d5   :  { %809 = vrot.lane.b32.xlu1 %v807_v34, %s1869_s24 }
 0x747   :  { %v810_v36 = vpop.permute.xlu1 %809 }
 0x748   :  { %v812_v37 = vadd.f32 %v810_v36, %v802_v35 }
 0x74a   :  { %1815 = vtanh.f32 %v812_v37 }
 0x757   :  { %v1816_v38 = vpop.eup %1815 }
 0x758   :  { %815 = vrot.lane.b32.xlu0 %v1816_v38, %s1869_s24 }
 0x75c   :  { %894 = vrot.lane.b32.xlu0 %v1945_v15, %s1873_s28 }
 0x7ca   :  { %v816_v39 = vpop.permute.xlu0 %815 }
 0x7cb   :  { %v818_v40 = vmul.f32 %v816_v39, %v800_v32 }
 0x7cd   :  { %820 = vrot.lane.b32.xlu1 %v818_v40, %s1871_s26 }
 0x7ce   :  { %v895_v41 = vpop.permute.xlu0 %894 }
 0x7cf   :  { %1742 = vmatmul.mubr.msk.f32.vlgmr.msra.gmra.mxu0 %vm374_vm3, %v895_v41  ;;  %v1335_v41 = vld [vmem:[#allocation2 + $0xb0] sm:$0xff] }
 0x7d0   :  { %1752 = vmatpush3.msra.mxu0 %v1934_v14  ;;  %1753 = vmatprep.mubr.msk.f32.mxu0 %vm1867_vm0, %v1866_v0 }
 0x7d1   :  { %1763 = vmatprep.subr.mxu0 %v1866_v0 }
 0x83f   :  { %v821_v42 = vpop.permute.xlu1 %820 }
 0x840   :  { %1737 = vmatmul.mubr.msk.f32.vlgmr.msra.gmra.mxu1 %vm300_vm6, %v821_v42 }
 0x841   :  { %1745 = vmatpush3.msra.mxu1 %v1925_v12  ;;  %1748 = vmatprep.mubr.msk.f32.mxu1 %vm1867_vm0, %v1866_v0 }
 0x842   :  { %1746 = vmatprep.subr.mxu1 %v1866_v0 }
 0x843   :  { %1747 = vmatpush3.msra.mxu1 %v1928_v13 }
 0x844   :  { %1756 = vmatprep.subr.mxu1 %v1866_v0 }
 0x88f   :  { %v964_v43 = vpop.f32.mrf.mxu0 }
 0x891   :  { %v1743_v44 = vpop.f32.mrf.mxu0 }
 0x892   :  { %v1573_v44 = vld [vmem:[#allocation2 + $0xc2] ss:$0 sm:$0xff] }
 0x900   :  { %v890_v45 = vpop.f32.mrf.mxu1 }
 0x901   :  { %v965_v46 = vadd.f32 %v964_v43, %v890_v45  ;;  %v291_v45 = vadd.f32 %v1573_v44, %v1984_v56  ;;  %v1590_v56 = vld [vmem:[#allocation2 + $0xc6] ss:$0 sm:$0xff] }
 0x902   :  { %v1738_v47 = vpop.f32.mrf.mxu1 }
 0x903   :  { %v968_v48 = vadd.f32 %v1959_v26, %v965_v46  ;;  %v294_v46 = vmax.f32 %v291_v45, 0.0 }
 0x905   :  { %1817 = vtanh.f32 %v968_v48  ;;  %v969_v50 = vmul.f32 0.5, %v968_v48  ;;  %v1448_v47 = vsel %vm1447_vm7, %v294_v46, 0.0  ;;  %v1418_v48 = vld [vmem:[%s2085_s2] sm:$0xff] }
 0x907   :  { %1819 = vtanh.f32 %v969_v50 }
 0x912   :  { %v1818_v49 = vpop.eup %1817 }
 0x913   :  { %976 = vrot.lane.b32.xlu1 %v1818_v49, %s1868_s1  ;;  %v1875_v49 = vmov 0  }
 0x914   :  { %v1820_v51 = vpop.eup %1819  ;;  %1797 = vset.pattern.permute.xlu1 %v1875_v49  ;;  %1798 = vset.pattern.permute.xlu0 %v1875_v49 }
 0x915   :  { %v971_v52 = vmul.f32 0.5, %v1820_v51  ;;  %v1589_v51 = vld [vmem:[#allocation2 + $0xc5] ss:$0 sm:$0xff] }
 0x917   :  { %v972_v53 = vadd.f32 0.5, %v971_v52 }
 0x919   :  { %v974_v57 = vmul.f32 %v972_v53, %v812_v37 }
 0x985   :  { %v977_v54 = vpop.permute.xlu1 %976 }
 0x986   :  { %v979_v55 = vmul.f32 %v977_v54, %v972_v53 }
 0x988   :  { %981 = vrot.lane.b32.xlu0 %v979_v55, %s1869_s24 }
 0x9fa   :  { %v982_v58 = vpop.permute.xlu0 %981 }
 0x9fb   :  { %v984_v59 = vadd.f32 %v982_v58, %v974_v57 }
 0x9fd   :  { %1821 = vtanh.f32 %v984_v59 }
 0xa0a   :  { %v1822_v60 = vpop.eup %1821 }
 0xa0b   :  { %987 = vrot.lane.b32.xlu1 %v1822_v60, %s1869_s24 }
 0xa0f   :  { %1066 = vrot.lane.b32.xlu1 %v1945_v15, %s1871_s26 }
 0xa7d   :  { %v988_v61 = vpop.permute.xlu1 %987 }
 0xa7e   :  { %v990_v62 = vmul.f32 %v988_v61, %v972_v53 }
 0xa80   :  { %992 = vrot.lane.b32.xlu0 %v990_v62, %s1871_s26 }
 0xa81   :  { %v1067_v63 = vpop.permute.xlu1 %1066 }
 0xa82   :  { %1754 = vmatmul.mubr.msk.f32.vlgmr.msra.gmra.mxu0 %vm374_vm3, %v1067_v63 }
 0xa83   :  { %1764 = vmatpush3.msra.mxu0 %v1934_v14  ;;  %1765 = vmatprep.mubr.msk.f32.mxu0 %vm1867_vm0, %v1866_v0 }
 0xaf2   :  { %v993_v1 = vpop.permute.xlu0 %992 }
 0xaf3   :  { %1749 = vmatmul.mubr.msk.f32.vlgmr.msra.gmra.mxu1 %vm300_vm6, %v993_v1  ;;  %v1587_v1 = vld [vmem:[#allocation2 + $0xc4] ss:$0 sm:$0xff] }
 0xaf4   :  { %1757 = vmatpush3.msra.mxu1 %v1925_v12  ;;  %1760 = vmatprep.mubr.msk.f32.mxu1 %vm1867_vm0, %v1866_v0 }
 0xaf5   :  { %1758 = vmatprep.subr.mxu1 %v1866_v0 }
 0xaf6   :  { %1759 = vmatpush3.msra.mxu1 %v1928_v13 }
 0xaf7   :  { %1768 = vmatprep.subr.mxu1 %v1866_v0 }
 0xb42   :  { %v1136_v2 = vpop.f32.mrf.mxu0 }
 0xb44   :  { %v1755_v3 = vpop.f32.mrf.mxu0 }
 0xbb3   :  { %v1062_v14 = vpop.f32.mrf.mxu1 }
 0xbb4   :  { %v1137_v4 = vadd.f32 %v1136_v2, %v1062_v14 }
 0xbb5   :  { %v1750_v5 = vpop.f32.mrf.mxu1 }
 0xbb6   :  { %v1140_v6 = vadd.f32 %v1959_v26, %v1137_v4  ;;  %v1592_v5 = vld [vmem:[#allocation2 + $0xc8] ss:$0 sm:$0xff] }
 0xbb8   :  { %1823 = vtanh.f32 %v1140_v6  ;;  %v1141_v12 = vmul.f32 0.5, %v1140_v6 }
 0xbba   :  { %1825 = vtanh.f32 %v1141_v12 }
 0xbc5   :  { %v1824_v7 = vpop.eup %1823 }
 0xbc6   :  { %1148 = vrot.lane.b32.xlu0 %v1824_v7, %s1868_s1 }
 0xbc7   :  { %v1826_v8 = vpop.eup %1825 }
 0xbc8   :  { %v1143_v9 = vmul.f32 0.5, %v1826_v8  ;;  %v1593_v8 = vld [vmem:[#allocation2 + $0xc9] ss:$0 sm:$0xff] }
 0xbca   :  { %v1144_v10 = vadd.f32 0.5, %v1143_v9 }
 0xbcc   :  { %v1146_v16 = vmul.f32 %v1144_v10, %v984_v59 }
 0xc38   :  { %v1149_v11 = vpop.permute.xlu0 %1148 }
 0xc39   :  { %v1151_v13 = vmul.f32 %v1149_v11, %v1144_v10 }
 0xc3b   :  { %1153 = vrot.lane.b32.xlu1 %v1151_v13, %s1869_s24 }
 0xcad   :  { %v1154_v17 = vpop.permute.xlu1 %1153 }
 0xcae   :  { %v1156_v18 = vadd.f32 %v1154_v17, %v1146_v16  ;;  %v1591_v16 = vld [vmem:[#allocation2 + $0xc7] ss:$0 sm:$0xff] }
 0xcb0   :  { %1827 = vtanh.f32 %v1156_v18 }
 0xcbd   :  { %v1828_v19 = vpop.eup %1827 }
 0xcbe   :  { %1159 = vrot.lane.b32.xlu0 %v1828_v19, %s1869_s24 }
 0xcc2   :  { %1238 = vrot.lane.b32.xlu0 %v1945_v15, %s1874_s29 }
 0xd30   :  { %v1160_v20 = vpop.permute.xlu0 %1159 }
 0xd31   :  { %v1162_v21 = vmul.f32 %v1160_v20, %v1144_v10  ;;  %v1443_v20 = vmul.f32 %v1591_v16, %v294_v46 }
 0xd33   :  { %1164 = vrot.lane.b32.xlu1 %v1162_v21, %s1871_s26 }
 0xd34   :  { %v1239_v22 = vpop.permute.xlu0 %1238 }
 0xd35   :  { %1766 = vmatmul.mubr.msk.f32.vlgmr.msra.gmra.mxu0 %vm374_vm3, %v1239_v22  ;;  %v1444_v22 = vsel %vm300_vm6, %v1443_v20, 0.0 }
 0xda5   :  { %v1165_v23 = vpop.permute.xlu1 %1164 }
 0xda6   :  { %1761 = vmatmul.mubr.msk.f32.vlgmr.msra.gmra.mxu1 %vm300_vm6, %v1165_v23 }
 0xda7   :  { %1772 = vmatprep.mubr.msk.f32.mxu1 %vm1867_vm0, %v1866_v0 }
 0xdf5   :  { %v1308_v24 = vpop.f32.mrf.mxu0 }
 0xdf7   :  { %v1767_v25 = vpop.f32.mrf.mxu0 }
 0xe66   :  { %v1234_v27 = vpop.f32.mrf.mxu1 }
 0xe67   :  { %v1309_v28 = vadd.f32 %v1308_v24, %v1234_v27 }
 0xe68   :  { %v1762_v29 = vpop.f32.mrf.mxu1 }
 0xe69   :  { %v1312_v15 = vadd.f32 %v1959_v26, %v1309_v28  ;;  %v1336_v26 = vld [vmem:[#allocation2 + $0xb8] sm:$0xff] }
 0xe6a   :  { %1769 = vmatpush3.msra.mxu1 %v1336_v26  ;;  %v1437_v26 = vld [vmem:[#allocation2 + $0xca] sm:$0x1] }
 0xe6b   :  { %1829 = vtanh.f32 %v1312_v15  ;;  %v1313_v31 = vmul.f32 0.5, %v1312_v15  ;;  %1770 = vmatprep.subr.mxu1 %v1866_v0 }
 0xe6c   :  { %1771 = vmatpush3.msra.mxu1 %v1335_v41 }
 0xe6d   :  { %1831 = vtanh.f32 %v1313_v31 }
 0xe78   :  { %v1830_v30 = vpop.eup %1829 }
 0xe79   :  { %1320 = vrot.lane.b32.xlu1 %v1830_v30, %s1868_s1 }
 0xe7a   :  { %v1832_v32 = vpop.eup %1831 }
 0xe7b   :  { %v1315_v33 = vmul.f32 0.5, %v1832_v32 }
 0xe7d   :  { %v1316_v34 = vadd.f32 0.5, %v1315_v33 }
 0xe7f   :  { %v1318_v37 = vmul.f32 %v1316_v34, %v1156_v18  ;;  %v1459_v18 = vmul.f32 %v294_v46, %v294_v46 }
 0xe81   :  { %v1460_v21 = vsel %vm300_vm6, %v1459_v18, 0.0 }
 0xeeb   :  { %v1321_v35 = vpop.permute.xlu1 %1320 }
 0xeec   :  { %v1323_v36 = vmul.f32 %v1321_v35, %v1316_v34 }
 0xeee   :  { %1325 = vrot.lane.b32.xlu0 %v1323_v36, %s1869_s24 }
 0xf60   :  { %v1326_v38 = vpop.permute.xlu0 %1325 }
 0xf61   :  { %v1328_v39 = vadd.f32 %v1326_v38, %v1318_v37 }
 0xf63   :  { %1833 = vtanh.f32 %v1328_v39  ;;  %v1465_v39 = vlaneseq }
 0xf70   :  { %v1834_v40 = vpop.eup %1833 }
 0xf71   :  { %1331 = vrot.lane.b32.xlu1 %v1834_v40, %s1869_s24  ;;  %v1466_v40 = vshrl.u32 %v1465_v39, 7 }
 0xf75   :  { %1422 = vperm.xlu1 %1797, %v1418_v48  }
 0xfe3   :  { %v1332_v42 = vpop.permute.xlu1 %1331 }
 0xfe4   :  { %v1334_v43 = vmul.f32 %v1332_v42, %v1316_v34  ;;  %v1467_v42 = vsub.s32 0, %v1466_v40 }
 0xfe6   :  { %1343 = vrot.lane.b32.xlu0 %v1334_v43, %s1871_s26 }
 0xff0   :  { %v1423_v53 = vpop.permute.xlu1 %1422 }
 0xff1   :  { %v1429_v55 = vmul.f32 %v1589_v51, %v1423_v53 }
 0xff3   :  { %v1435_v58 = vadd.f32 %v1590_v56, %v1429_v55 }
 0xff5   :  { %v1436_v60 = vmax.f32 %v1435_v58, 0.0 }
 0xff7   :  { %v1519_v62 = vsel %vm1447_vm7, %v1436_v60, 0.0  ;;  %v1530_v12 = vmul.f32 %v1436_v60, %v1436_v60  ;;  %v1515_v13 = vmul.f32 %v1593_v8, %v1436_v60 }
 0xff9   :  { %v1531_v11 = vsel %vm300_vm6, %v1530_v12, 0.0  ;;  %v1516_v19 = vsel %vm300_vm6, %v1515_v13, 0.0 }
0x1005   :  { %1449 = vadd.xlane.f32.xlu0 %v1448_v47 }
0x1009   :  { %1520 = vadd.xlane.f32.xlu0 %v1519_v62 }
0x1058   :  { %v1344_v0 = vpop.permute.xlu0 %1343 }
0x1059   :  { %1773 = vmatmul.mubr.msk.f32.vlgmr.msra.gmra.mxu1 %vm300_vm6, %v1344_v0 }
0x108e   :  { %v1450_v50 = vpop.xlane.xlu0 %1449 }
0x108f   :  { %v1451_v52 = vrot.slane %v1450_v50, 4 }
0x1091   :  { %v1452_v54 = vadd.f32 %v1451_v52, %v1450_v50 }
0x1092   :  { %v1521_v23 = vpop.xlane.xlu0 %1520 }
0x1093   :  { %v1453_v57 = vrot.slane %v1452_v54, 2  ;;  %v1522_v24 = vrot.slane %v1521_v23, 4 }
0x1095   :  { %v1454_v59 = vadd.f32 %v1453_v57, %v1452_v54  ;;  %v1523_v25 = vadd.f32 %v1522_v24, %v1521_v23  ;;  %v1551_v54 = vrot.slane %v1437_v26, %v1467_v42 }
0x1097   :  { %v1455_v61 = vrot.slane %v1454_v59, 1  ;;  %v1524_v27 = vrot.slane %v1523_v25, 2 }
0x1099   :  { %v1456_v63 = vadd.f32 %v1455_v61, %v1454_v59  ;;  %v1525_v30 = vadd.f32 %v1524_v27, %v1523_v25 }
0x109b   :  { %1775 = vpush %v1456_v63  ;;  %v1526_v33 = vrot.slane %v1525_v30, 1 }
0x109d   :  { %v1527_v36 = vadd.f32 %v1526_v33, %v1525_v30 }
0x10cc   :  { %s2077_s2 = spop %1775 }
0x10cd   :  { %s1458_s13 = smul.f32 0.03125, %s2077_s2 }
0x10cf   :  { %v1463_v57 = vstv %s1458_s13 }
0x10d0   :  { %v1464_v58 = vmul.f32 %v1463_v57, %v1437_v26 }
0x10d2   :  { %v1468_v60 = vrot.slane %v1464_v58, %v1467_v42 }
0x1119   :  { %v1413_v2 = vpop.f32.mrf.mxu1 }
0x111a   :  { %v1414_v3 = vadd.f32 %v1587_v1, %v1413_v2 }
0x111b   :  { %v1774_v14 = vpop.f32.mrf.mxu1 }
0x111c   :  { %v1417_v4 = vmax.f32 %v1414_v3, 0.0 }
0x111e   :  { %v1481_v6 = vsel %vm1447_vm7, %v1417_v4, 0.0  ;;  %v1492_v7 = vmul.f32 %v1417_v4, %v1417_v4  ;;  %v1477_v10 = vmul.f32 %v1592_v5, %v1417_v4 }
0x111f   :  { %1482 = vadd.xlane.f32.xlu1 %v1481_v6 }
0x1120   :  { %v1493_v9 = vsel %vm300_vm6, %v1492_v7, 0.0  ;;  %v1478_v17 = vsel %vm300_vm6, %v1477_v10, 0.0 }
0x1121   :  { %1494 = vadd.xlane.f32.xlu0 %v1493_v9 }
0x1123   :  { %1532 = vadd.xlane.f32.xlu1 %v1531_v11 }
0x1125   :  { %1479 = vadd.xlane.f32.xlu0 %v1478_v17 }
0x1127   :  { %1517 = vadd.xlane.f32.xlu1 %v1516_v19 }
0x1129   :  { %1461 = vadd.xlane.f32.xlu0 %v1460_v21 }
0x112b   :  { %1445 = vadd.xlane.f32.xlu1 %v1444_v22 }
0x11a8   :  { %v1483_v28 = vpop.xlane.xlu1 %1482 }
0x11a9   :  { %v1484_v29 = vrot.slane %v1483_v28, 4 }
0x11aa   :  { %v1495_v37 = vpop.xlane.xlu0 %1494 }
0x11ab   :  { %v1485_v15 = vadd.f32 %v1484_v29, %v1483_v28  ;;  %1835 = vrsqrt.f32 %v1495_v37 }
0x11ac   :  { %v1533_v38 = vpop.xlane.xlu1 %1532 }
0x11ad   :  { %v1486_v31 = vrot.slane %v1485_v15, 2  ;;  %1837 = vrsqrt.f32 %v1533_v38 }
0x11ae   :  { %v1480_v47 = vpop.xlane.xlu0 %1479 }
0x11af   :  { %v1487_v32 = vadd.f32 %v1486_v31, %v1485_v15 }
0x11b0   :  { %v1518_v49 = vpop.xlane.xlu1 %1517 }
0x11b1   :  { %v1488_v34 = vrot.slane %v1487_v32, 1 }
0x11b2   :  { %v1462_v55 = vpop.xlane.xlu0 %1461 }
0x11b3   :  { %v1489_v35 = vadd.f32 %v1488_v34, %v1487_v32  ;;  %1839 = vrsqrt.f32 %v1462_v55 }
0x11b4   :  { %v1446_v59 = vpop.xlane.xlu1 %1445 }
0x11b5   :  { %1777 = vpush %v1489_v35  ;;  %v1469_v62 = vsub.f32 %v1446_v59, %v1468_v60 }
0x11b6   :  { %1779 = vpush %v1527_v36 }
0x11b8   :  { %v1836_v50 = vpop.eup %1835 }
0x11ba   :  { %v1838_v52 = vpop.eup %1837 }
0x11c0   :  { %v1840_v61 = vpop.eup %1839 }
0x11c1   :  { %v1471_v63 = vmul.f32 %v1840_v61, %v1469_v62 }
0x11e6   :  { %s1778_s6 = spop %1777 }
0x11e7   :  { %s1491_s7 = smul.f32 0.03125, %s1778_s6  ;;  %s1780_s8 = spop %1779 }
0x11e8   :  { %s1529_s9 = smul.f32 0.03125, %s1780_s8 }
0x11e9   :  { %v1496_v41 = vstv %s1491_s7 }
0x11ea   :  { %v1497_v43 = vmul.f32 %v1496_v41, %v1437_v26  ;;  %v1534_v44 = vstv %s1529_s9 }
0x11eb   :  { %v1535_v45 = vmul.f32 %v1534_v44, %v1437_v26 }
0x11ec   :  { %v1501_v46 = vrot.slane %v1497_v43, %v1467_v42 }
0x11ed   :  { %v1539_v48 = vrot.slane %v1535_v45, %v1467_v42 }
0x11ee   :  { %v1502_v0 = vsub.f32 %v1480_v47, %v1501_v46 }
0x11ef   :  { %v1540_v51 = vsub.f32 %v1518_v49, %v1539_v48 }
0x11f0   :  { %v1504_v56 = vmul.f32 %v1836_v50, %v1502_v0 }
0x11f1   :  { %v1542_v53 = vmul.f32 %v1838_v52, %v1540_v51 }
0x11f2   :  { %1506 = vrot.lane.b32.xlu0 %v1504_v56, %s1876_s10 }
0x11f3   :  { %1544 = vrot.lane.b32.xlu1 %v1542_v53, %s1877_s11 }
0x11f7   :  { %1553 = vrot.lane.b32.xlu1 %v1551_v54, %s1878_s12 }
0x1264   :  { %v1507_v1 = vpop.permute.xlu0 %1506 }
0x1265   :  { %v1509_v2 = vadd.f32 %v1507_v1, %v1471_v63  ;;  %v1545_v3 = vpop.permute.xlu1 %1544 }
0x1267   :  { %v1547_v14 = vadd.f32 %v1545_v3, %v1509_v2 }
0x1269   :  { %v1554_v4 = vpop.permute.xlu1 %1553 }
0x126a   :  { %v1556_v5 = vadd.f32 %v1554_v4, %v1547_v14 }
0x126c   :  { %1558 = vrot.lane.b32.xlu0 %v1556_v5, %s1876_s10 }
0x12de   :  { %v1559_v6 = vpop.permute.xlu0 %1558 }
0x12df   :  { %1562 = vst.msk [vmem:[%s2087_s4] sm:$0xff] %vm1561_vm8, %v1559_v6 }
0x12e0   :  { %1567 = vsyncpa [#allocation3], 1 }

</bundles_post_ra>
